<compile_context>
chip_gen: v6e
topology: v6e:2x2x1
jax: 0.10.0
libtpu: 0.0.40
codegen_flags: <defaults>
</compile_context>

<pallas_src>
import jax
import jax.numpy as jnp
from jax import lax
from jax.experimental import pallas as pl
from jax.experimental.pallas import tpu as pltpu


def _predictor_batchid_kernel(x_ref, w1_ref, b1_ref, w2_ref, b2_ref, ot_ref):
    # x_ref:  [TM, D]      natural-layout input tile (contiguous DMA)
    # w1_ref: [D, B*H]     all first-layer weights, lane-dense, resident
    # b1_ref: [1, B*H]     first-layer biases (row broadcast)
    # w2_ref: [Bp, B*H]    block-diagonal second-layer weights (Bp = pad(B, 8))
    # b2_ref: [Bp, 1]      second-layer biases (lane broadcast)
    # ot_ref: [Bp, TM]     transposed output tile (lane-dense, unmasked store)
    h = jnp.dot(x_ref[...], w1_ref[...],
                preferred_element_type=jnp.float32)            # [TM, B*H]  (1 MXU call)
    h = jnp.maximum(h + b1_ref[...], 0.0)                      # fused bias + ReLU (VPU)
    # Contract both last dims (q@k.T pattern): W2_bd @ h.T -> [Bp, TM].
    y = lax.dot_general(w2_ref[...], h, (((1,), (1,)), ((), ())),
                        preferred_element_type=jnp.float32)    # [Bp, TM]   (1 MXU call)
    y = jnp.tanh(y + b2_ref[...])                              # EUP tanh -> values in [-1, 1]
    ot_ref[...] = y.astype(ot_ref.dtype)


def predictor_batchid(x, w1, b1, w2, b2, *, tile_m: int = 256):
    """x: [N, D]; w1: [B, D, H]; b1: [B, H]; w2: [B, H]; b2: [1, B] -> [N, B].

    tile_m: samples per grid step.  Keep >= 2 grid steps on v7x (2 TCs); on
    single-TC v5e/v6e a single big tile (tile_m >= N, up to ~2048) is best.
    """
    N, D = x.shape
    B, D2, H = w1.shape
    assert D2 == D
    BH = B * H
    Bp = max(8, ((B + 7) // 8) * 8)          # pad heads to a full sublane group

    tile_m = max(128, tile_m)
    assert tile_m % 128 == 0, "tile_m must be a multiple of 128 for lane-dense stores"

    # --- one-time (tiny) weight re-layout; x itself is untouched -------------
    # W1_d[d, b*H + j] = w1[b, d, j]  -> lane-dense [D, B*H]
    w1d = jnp.transpose(w1, (1, 0, 2)).reshape(D, BH)
    b1r = b1.reshape(1, BH)
    # Block-diagonal second layer, rows padded to Bp: W2_bd[b, b*H:(b+1)*H] = w2[b].
    w2bd = (jnp.eye(B, dtype=w2.dtype)[:, :, None] * w2[None, :, :]).reshape(B, BH)
    w2bd = jnp.pad(w2bd, ((0, Bp - B), (0, 0)))
    b2c = jnp.pad(b2.reshape(B, 1), ((0, Bp - B), (0, 0)))

    grid = (pl.cdiv(N, tile_m),)             # partial edge tile handled by masking
    flops = 2 * N * D * BH + 2 * N * BH * Bp
    bytes_accessed = 4 * (N * D + D * BH + BH + Bp * BH + Bp + Bp * N)

    out_t = pl.pallas_call(
        _predictor_batchid_kernel,
        out_shape=jax.ShapeDtypeStruct((Bp, N), x.dtype),
        grid_spec=pl.GridSpec(
            grid=grid,
            in_specs=[
                pl.BlockSpec((tile_m, D), lambda i: (i, 0)),   # x tile (streamed)
                pl.BlockSpec((D, BH), lambda i: (0, 0)),       # W1 (resident)
                pl.BlockSpec((1, BH), lambda i: (0, 0)),       # b1 (resident)
                pl.BlockSpec((Bp, BH), lambda i: (0, 0)),      # W2_bd (resident)
                pl.BlockSpec((Bp, 1), lambda i: (0, 0)),       # b2 (resident)
            ],
            out_specs=pl.BlockSpec((Bp, tile_m), lambda i: (0, i)),
        ),
        compiler_params=pltpu.CompilerParams(
            dimension_semantics=("parallel",)),
        cost_estimate=pl.CostEstimate(
            flops=flops, transcendentals=N * Bp, bytes_accessed=bytes_accessed),
    )(x, w1d, b1r, w2bd, b2c)

    # Drop the padded head rows; transpose of the tiny [B, N] result back to [N, B].
    return out_t[:B, :N].T


def _reference(x, w1, b1, w2, b2):
    """Plain-JAX reference of the same forward pass (per-head loop, like PyTorch)."""
    B = w1.shape[0]
    cols = []
    for b in range(B):
        h = jnp.maximum(x @ w1[b] + b1[b][None, :], 0.0)
        y = jnp.tanh(jnp.sum(h * w2[b][None, :], axis=-1, keepdims=True) + b2[0, b])
        cols.append(y)
    return jnp.concatenate(cols, axis=1)


if __name__ == "__main__":
    # N samples, D input features, H hidden units, B batch IDs.
    N, D, H, B = 512, 32, 32, 4

    key = jax.random.PRNGKey(0)
    kx, kw1, kb1, kw2, kb2 = jax.random.split(key, 5)

    x = jax.random.normal(kx, (N, D), dtype=jnp.float32)
    # Deterministic synthetic parameters for the B sub-networks.
    # TODO(synk): the PyTorch module takes arbitrary `list_modules`; a 2-layer
    # MLP + tanh head (the standard [-1,1]-bounded predictor) is assumed here.
    w1 = 0.1 * jax.random.normal(kw1, (B, D, H), dtype=jnp.float32)
    b1 = 0.1 * jax.random.normal(kb1, (B, H), dtype=jnp.float32)
    w2 = 0.1 * jax.random.normal(kw2, (B, H), dtype=jnp.float32)
    b2 = 0.1 * jax.random.normal(kb2, (1, B), dtype=jnp.float32)

    out = jax.block_until_ready(predictor_batchid(x, w1, b1, w2, b2, tile_m=256))

    ref = _reference(x, w1, b1, w2, b2)
    assert out.shape == (N, B)
    assert bool(jnp.all(out <= 1.0)) and bool(jnp.all(out >= -1.0))
    assert jnp.allclose(out, ref, atol=1e-5, rtol=1e-5)

    print("KERNEL_OK")
</pallas_src>

<mosaic_0001>
module attributes {stable_mosaic.version = 11 : i64} {
  func.func @_predictor_batchid_kernel(%arg0: i32, %arg1: memref<256x32xf32, #tpu.memory_space<vmem>>, %arg2: memref<32x128xf32, #tpu.memory_space<vmem>>, %arg3: memref<1x128xf32, #tpu.memory_space<vmem>>, %arg4: memref<8x128xf32, #tpu.memory_space<vmem>>, %arg5: memref<8x1xf32, #tpu.memory_space<vmem>>, %arg6: memref<8x256xf32, #tpu.memory_space<vmem>>) attributes {dimension_semantics = [#tpu.dimension_semantics<parallel>], iteration_bounds = array<i64: 2>, scalar_prefetch = 0 : i64, scratch_operands = 0 : i64, tpu.core_type = #tpu.core_type<tc>, window_params = [{transform_indices = @transform_0, window_bounds = array<i64: 256, 32>}, {pipeline_mode = #tpu.pipeline_mode<synchronous>, transform_indices = @transform_1, window_bounds = array<i64: 32, 128>}, {pipeline_mode = #tpu.pipeline_mode<synchronous>, transform_indices = @transform_2, window_bounds = array<i64: 1, 128>}, {pipeline_mode = #tpu.pipeline_mode<synchronous>, transform_indices = @transform_3, window_bounds = array<i64: 8, 128>}, {pipeline_mode = #tpu.pipeline_mode<synchronous>, transform_indices = @transform_4, window_bounds = array<i64: 8, 1>}, {transform_indices = @transform_5, window_bounds = array<i64: 8, 256>}]} {
    %c0 = arith.constant 0 : index
    %c0_0 = arith.constant 0 : index
    %0 = vector.load %arg1[%c0, %c0_0] : memref<256x32xf32, #tpu.memory_space<vmem>>, vector<256x32xf32>
    %c0_1 = arith.constant 0 : index
    %c0_2 = arith.constant 0 : index
    %1 = vector.load %arg2[%c0_1, %c0_2] : memref<32x128xf32, #tpu.memory_space<vmem>>, vector<32x128xf32>
    %cst = arith.constant dense<0.000000e+00> : vector<256x128xf32>
    %2 = tpu.matmul %0, %1, %cst {dimension_numbers = #tpu.dot_dimension_numbers<[1], [0], [0], [1], [0, 0, 1, 1], [], []>} : vector<256x32xf32>, vector<32x128xf32>, vector<256x128xf32> -> vector<256x128xf32>
    %c0_3 = arith.constant 0 : index
    %c0_4 = arith.constant 0 : index
    %3 = vector.load %arg3[%c0_3, %c0_4] : memref<1x128xf32, #tpu.memory_space<vmem>>, vector<1x128xf32>
    %4 = vector.broadcast %3 : vector<1x128xf32> to vector<256x128xf32>
    %5 = arith.addf %2, %4 : vector<256x128xf32>
    %cst_5 = arith.constant 0.000000e+00 : f32
    %6 = vector.broadcast %cst_5 : f32 to vector<256x128xf32>
    %7 = arith.maximumf %5, %6 : vector<256x128xf32>
    %c0_6 = arith.constant 0 : index
    %c0_7 = arith.constant 0 : index
    %8 = vector.load %arg4[%c0_6, %c0_7] : memref<8x128xf32, #tpu.memory_space<vmem>>, vector<8x128xf32>
    %cst_8 = arith.constant dense<0.000000e+00> : vector<8x256xf32>
    %9 = tpu.matmul %8, %7, %cst_8 {dimension_numbers = #tpu.dot_dimension_numbers<[1], [1], [0], [0], [0, 0, 1, 0], [], []>} : vector<8x128xf32>, vector<256x128xf32>, vector<8x256xf32> -> vector<8x256xf32>
    %c0_9 = arith.constant 0 : index
    %c0_10 = arith.constant 0 : index
    %10 = vector.load %arg5[%c0_9, %c0_10] : memref<8x1xf32, #tpu.memory_space<vmem>>, vector<8x1xf32>
    %11 = vector.broadcast %10 : vector<8x1xf32> to vector<8x256xf32>
    %12 = arith.addf %9, %11 : vector<8x256xf32>
    %13 = math.tanh %12 : vector<8x256xf32>
    %c0_11 = arith.constant 0 : index
    %c0_12 = arith.constant 0 : index
    %14 = vector.load %arg6[%c0_11, %c0_12] : memref<8x256xf32, #tpu.memory_space<vmem>>, vector<8x256xf32>
    tpu.vector_store %arg6[%c0_11, %c0_12], %13 {strides = array<i32>} : memref<8x256xf32, #tpu.memory_space<vmem>>, vector<8x256xf32>,
    return
  }
  func.func @transform_0(%arg0: i32) -> (i32, i32) {
    %c0_i32 = arith.constant 0 : i32
    %c0_i32_0 = arith.constant 0 : i32
    return %arg0, %c0_i32 : i32, i32
  }
  func.func @transform_1(%arg0: i32) -> (i32, i32) {
    %c0_i32 = arith.constant 0 : i32
    %c0_i32_0 = arith.constant 0 : i32
    %c0_i32_1 = arith.constant 0 : i32
    return %c0_i32, %c0_i32_0 : i32, i32
  }
  func.func @transform_2(%arg0: i32) -> (i32, i32) {
    %c0_i32 = arith.constant 0 : i32
    %c0_i32_0 = arith.constant 0 : i32
    %c0_i32_1 = arith.constant 0 : i32
    return %c0_i32, %c0_i32_0 : i32, i32
  }
  func.func @transform_3(%arg0: i32) -> (i32, i32) {
    %c0_i32 = arith.constant 0 : i32
    %c0_i32_0 = arith.constant 0 : i32
    %c0_i32_1 = arith.constant 0 : i32
    return %c0_i32, %c0_i32_0 : i32, i32
  }
  func.func @transform_4(%arg0: i32) -> (i32, i32) {
    %c0_i32 = arith.constant 0 : i32
    %c0_i32_0 = arith.constant 0 : i32
    %c0_i32_1 = arith.constant 0 : i32
    return %c0_i32, %c0_i32_0 : i32, i32
  }
  func.func @transform_5(%arg0: i32) -> (i32, i32) {
    %c0_i32 = arith.constant 0 : i32
    %c0_i32_0 = arith.constant 0 : i32
    return %c0_i32, %arg0 : i32, i32
  }
}

</mosaic_0001>

<bundles_post_ra>
// kernel: tpu_custom_call.1
= control target key start
LH: loop header
LB: loop body
LE: loop exit
PB: predicated region body
PF: predicated region fallthrough
CT: control target
= control target key end

     0   :  { %10 = vsyncpa [#allocation3], 0  ;;  %s1352_s0 = inlined_call_operand.vmem [shape: f32[512,32], index: 0, kind: input, shape index: {}]   ;;  %s1353_s1 = inlined_call_operand.vmem [shape: f32[32,128], index: 1, kind: input, shape index: {}]   ;;  %s1354_s2 = inlined_call_operand.vmem [shape: f32[1,128], index: 2, kind: input, shape index: {}]   ;;  %s1355_s3 = inlined_call_operand.vmem [shape: f32[8,128], index: 3, kind: input, shape index: {}]   ;;  %s1356_s4 = inlined_call_operand.vmem [shape: f32[8,1], index: 4, kind: input, shape index: {}]   ;;  %s1357_s5 = inlined_call_operand.hbm [shape: f32[8,512], index: 5, kind: output, shape index: {}]  }
   0x1   :  { %12 = vsyncpa [#allocation3 + $0x1], 0  ;;  %s1090_s18 = smov 0   ;;  %s1092_s19 = smov 0  }
   0x2   :  { %s1094_s20 = smov 0   ;;  %s1096_s21 = smov 0  }
   0x3 LB: > { %s1111_s22 = sadd.s32 4294967295, %s1056_s21   ;;  %s779_s23 = sadd.s32 4294967294, %s1056_s21   ;;  %s1056_s21 = sphi %s1096_s21, %s1363_s21   ;;  %s1052_s20 = sphi %s1094_s20, %s1362_s20   ;;  %s1048_s19 = sphi %s1092_s19, %s1361_s19   ;;  %s1044_s18 = sphi %s1090_s18, %s1360_s18  }
   0x4   : > { %s1115_s24 = sadd.s32 1, %s1056_s21   ;;  %s135_s25 = sadd.s32 1, %s1052_s20 }
   0x5   : > { %s132_s26 = ssub.s32 %s1056_s21, %s1115_s24  ;;  %p145_p0 = scmp.ne.s32.totalorder %s1052_s20, %s1048_s19 }
   0x6   : > { %p133_p1 = scmp.eq.s32.totalorder %s132_s26, 0  ;;  %p146_p2 = scmp.eq.s32.totalorder %s1111_s22, 1 }
   0x7   : > { %p151_p3 = scmp.ne.s32.totalorder %s1048_s19, %s1044_s18  ;;  %p152_p4 = scmp.eq.s32.totalorder %s779_s23, 1 }
   0x8   : > { %s1126_s27 = scalar_select %p133_p1, %s1052_s20, %s135_s25  }
   0x9   : > { %p1128_p5 = por %p146_p2, %p145_p0  ;;  %p1132_p6 = por %p152_p4, %p151_p3 }
   0xa   : > { %p782_p7 = scmp.ge.s32.totalorder %s1056_s21, 1  ;;  %p191_p8 = scmp.lt.s32.totalorder %s1056_s21, 3 }
   0xc   : > { %p192_p9 = pnand %p782_p7, %p191_p8 }
   0xd   : > { %s784_s9 = sshll.u32 (!%p192_p9), %s1111_s22, 5  ;;  %s216_s8 = sand.u32 (!%p192_p9), 1, %s1048_s19  }
   0xe   : > { %195 = sbr.rel (%p192_p9) target bundleno = 573 (0x23d), region = 40  ;;  %p220_p10 = scmp.lt.s32.totalorder (!%p192_p9), %s784_s9, 63 }
   0xf   : > { %s824_s10 = sshll.u32 (!%p192_p9), %s1111_s22, 8  ;;  %s706_s16 = scalar_lea.sflag (!%p192_p9), [#allocation3], %s216_s8 }
  0x10   : > { %s1317_s15 = scalar_lea.hbm (!%p192_p9), %s1357_s5, %s824_s10  ;;  %s1059_s23 = smov (!%p192_p9), [#allocation2]  }
  0x11   : > { %s1000_s22 = sshll.u32 (!%p192_p9), %s1059_s23, 4  ;;  %s1001_s22 = int_to_ptr.vmem [resolvable:$false] %s1000_s22 }
  0x12   : > { %s1002_s25 = scalar_lea.vmem (!%p192_p9), %s1001_s22, 512 }
  0x13   : > { %v261_v0 = vld [vmem:[%s1353_s1 + $0x18] sm:$0xff]  ;;  %v260_v1 = vld [vmem:[%s1353_s1 + $0x10] sm:$0xff]  ;;  %v259_v2 = vld [vmem:[%s1353_s1 + $0x8] sm:$0xff]  ;;  %s1365_s9 = smov (!%p220_p10, %s784_s9), 63  ;;  %vm269_vm0 = vcmask 261120   ;;  %v1058_v40 = vmov 0  }
  0x14   : > { %895 = vmatprep.subr.mxu0 %v261_v0  ;;  %v258_v3 = vld [vmem:[%s1353_s1] sm:$0xff]  ;;  %s785_s14 = sshll.u32 %s1365_s9, 3  ;;  %991 = vset.pattern.permute.xlu0 %v1058_v40  ;;  %s783_s9 = sshll.u32 %s216_s8, 4 }
  0x15   : > { %896 = vmatpush3.msra.mxu0 %v261_v0  ;;  %s1154_s17 = scalar_lea.vmem %s1352_s0, %s785_s14  ;;  %v1223_v36 = vld [vmem:[%s1355_s3] sm:$0xff]  ;;  %s218_s11 = scalar_lea.vmem [#allocation2], %s783_s9 }
  0x16   : > { %897 = vmatprep.subr.mxu0 %v260_v1  ;;  %v226_v4 = vld [vmem:[%s1154_s17] sm:$0xff]  ;;  %v227_v5 = vld [vmem:[%s1154_s17 + $0x8] sm:$0xff]  ;;  %v228_v6 = vld [vmem:[%s1154_s17 + $0x10] sm:$0xff]  ;;  %893 = vmatprep.mubr.f32.mxu1 %v1223_v36  ;;  %s720_s12 = sshll.u32 %s218_s11, 4  ;;  %s721_s12 = int_to_ptr.vmem [resolvable:$true] %s720_s12 }
  0x17   : > { %898 = vmatpush3.msra.mxu0 %v260_v1  ;;  %903 = vmatprep.mubr.msk.f32.mxu0 %vm269_vm0, %v226_v4  ;;  %v229_v7 = vld [vmem:[%s1154_s17 + $0x18] sm:$0xff]  ;;  %v230_v8 = vld [vmem:[%s1154_s17 + $0x20] sm:$0xff]  ;;  %v231_v9 = vld [vmem:[%s1154_s17 + $0x28] sm:$0xff]  ;;  %p1003_p0 = scmp.lt.s32.totalorder %s721_s12, %s1001_s22 }
  0x18   : > { %899 = vmatprep.subr.mxu0 %v259_v2  ;;  %v232_v10 = vld [vmem:[%s1154_s17 + $0x30] sm:$0xff]  ;;  %v233_v11 = vld [vmem:[%s1154_s17 + $0x38] sm:$0xff]  ;;  %v234_v12 = vld [vmem:[%s1154_s17 + $0x40] sm:$0xff] }
  0x19   : > { %900 = vmatpush3.msra.mxu0 %v259_v2  ;;  %v235_v13 = vld [vmem:[%s1154_s17 + $0x48] sm:$0xff]  ;;  %v236_v14 = vld [vmem:[%s1154_s17 + $0x50] sm:$0xff]  ;;  %v237_v15 = vld [vmem:[%s1154_s17 + $0x58] sm:$0xff] }
  0x1a   : > { %901 = vmatprep.subr.mxu0 %v258_v3  ;;  %v238_v16 = vld [vmem:[%s1154_s17 + $0x60] sm:$0xff]  ;;  %v239_v17 = vld [vmem:[%s1154_s17 + $0x68] sm:$0xff]  ;;  %v240_v18 = vld [vmem:[%s1154_s17 + $0x70] sm:$0xff] }
  0x1b   : > { %902 = vmatpush3.msra.mxu0 %v258_v3  ;;  %v241_v19 = vld [vmem:[%s1154_s17 + $0x78] sm:$0xff]  ;;  %v242_v20 = vld [vmem:[%s1154_s17 + $0x80] sm:$0xff]  ;;  %v243_v21 = vld [vmem:[%s1154_s17 + $0x88] sm:$0xff] }
  0x1c   : > { %904 = vmatmul.mubr.msk.f32.vlgmr.msra.gmra.mxu0 %vm269_vm0, %v227_v5  ;;  %v244_v22 = vld [vmem:[%s1154_s17 + $0x90] sm:$0xff]  ;;  %v245_v23 = vld [vmem:[%s1154_s17 + $0x98] sm:$0xff]  ;;  %v246_v24 = vld [vmem:[%s1154_s17 + $0xa0] sm:$0xff] }
  0x1d   : > { %906 = vmatprep.mubr.msk.f32.mxu0 %vm269_vm0, %v228_v6  ;;  %v247_v25 = vld [vmem:[%s1154_s17 + $0xa8] sm:$0xff]  ;;  %v248_v26 = vld [vmem:[%s1154_s17 + $0xb0] sm:$0xff]  ;;  %v249_v27 = vld [vmem:[%s1154_s17 + $0xb8] sm:$0xff] }
  0x1e   : > { %v250_v28 = vld [vmem:[%s1154_s17 + $0xc0] sm:$0xff]  ;;  %v251_v29 = vld [vmem:[%s1154_s17 + $0xc8] sm:$0xff]  ;;  %v252_v30 = vld [vmem:[%s1154_s17 + $0xd0] sm:$0xff] }
  0x1f   : > { %v253_v31 = vld [vmem:[%s1154_s17 + $0xd8] sm:$0xff]  ;;  %v254_v32 = vld [vmem:[%s1154_s17 + $0xe0] sm:$0xff]  ;;  %v255_v33 = vld [vmem:[%s1154_s17 + $0xe8] sm:$0xff] }
  0x20   : > { %907 = vmatmul.mubr.msk.f32.gmra.mxu0 %vm269_vm0, %v229_v7  ;;  %v256_v34 = vld [vmem:[%s1154_s17 + $0xf0] sm:$0xff]  ;;  %v257_v35 = vld [vmem:[%s1154_s17 + $0xf8] sm:$0xff]  ;;  %v624_v38 = vld [vmem:[%s1356_s4] sm:$0xff]  ;;  %s996_s17 = scalar_lea.vmem %s721_s12, 256 }
  0x21   : > { %909 = vmatprep.mubr.msk.f32.mxu0 %vm269_vm0, %v230_v8  ;;  %627 = vperm.xlu0 %991, %v624_v38   ;;  %v1262_v5 = vld [vmem:[%s1354_s2] ss:$0 sm:$0xff]  ;;  %p997_p11 = scmp.ne.s32.totalorder %s721_s12, %s996_s17  ;;  %p1004_p1 = scmp.lt.s32.totalorder %s1002_s25, %s996_s17 }
  0x23   : > { %p998_p12 = pnand %p997_p11, %p1128_p5  ;;  %p1005_p2 = por %p1004_p1, %p1003_p0 }
  0x24   : > { %910 = vmatmul.mubr.msk.f32.gmra.mxu0 %vm269_vm0, %v231_v9 }
  0x25   : > { %912 = vmatprep.mubr.msk.f32.mxu0 %vm269_vm0, %v232_v10  ;;  %p999_p13 = pneg %p998_p12 }
  0x27   : > { %p1006_p3 = pnand %p1005_p2, %p999_p13 }
  0x28   : > { %913 = vmatmul.mubr.msk.f32.gmra.mxu0 %vm269_vm0, %v233_v11 }
  0x29   : > { %915 = vmatprep.mubr.msk.f32.mxu0 %vm269_vm0, %v234_v12 }
  0x2c   : > { %916 = vmatmul.mubr.msk.f32.gmra.mxu0 %vm269_vm0, %v235_v13 }
  0x2d   : > { %918 = vmatprep.mubr.msk.f32.mxu0 %vm269_vm0, %v236_v14 }
  0x30   : > { %919 = vmatmul.mubr.msk.f32.gmra.mxu0 %vm269_vm0, %v237_v15 }
  0x31   : > { %921 = vmatprep.mubr.msk.f32.mxu0 %vm269_vm0, %v238_v16 }
  0x34   : > { %922 = vmatmul.mubr.msk.f32.gmra.mxu0 %vm269_vm0, %v239_v17 }
  0x35   : > { %924 = vmatprep.mubr.msk.f32.mxu0 %vm269_vm0, %v240_v18 }
  0x38   : > { %925 = vmatmul.mubr.msk.f32.gmra.mxu0 %vm269_vm0, %v241_v19 }
  0x39   : > { %927 = vmatprep.mubr.msk.f32.mxu0 %vm269_vm0, %v242_v20 }
  0x3c   : > { %928 = vmatmul.mubr.msk.f32.gmra.mxu0 %vm269_vm0, %v243_v21 }
  0x3d   : > { %930 = vmatprep.mubr.msk.f32.mxu0 %vm269_vm0, %v244_v22 }
  0x40   : > { %931 = vmatmul.mubr.msk.f32.gmra.mxu0 %vm269_vm0, %v245_v23 }
  0x41   : > { %933 = vmatprep.mubr.msk.f32.mxu0 %vm269_vm0, %v246_v24 }
  0x44   : > { %934 = vmatmul.mubr.msk.f32.gmra.mxu0 %vm269_vm0, %v247_v25 }
  0x45   : > { %936 = vmatprep.mubr.msk.f32.mxu0 %vm269_vm0, %v248_v26 }
  0x48   : > { %937 = vmatmul.mubr.msk.f32.gmra.mxu0 %vm269_vm0, %v249_v27 }
  0x49   : > { %939 = vmatprep.mubr.msk.f32.mxu0 %vm269_vm0, %v250_v28 }
  0x4c   : > { %940 = vmatmul.mubr.msk.f32.gmra.mxu0 %vm269_vm0, %v251_v29 }
  0x4d   : > { %942 = vmatprep.mubr.msk.f32.mxu0 %vm269_vm0, %v252_v30 }
  0x50   : > { %943 = vmatmul.mubr.msk.f32.gmra.mxu0 %vm269_vm0, %v253_v31 }
  0x51   : > { %945 = vmatprep.mubr.msk.f32.mxu0 %vm269_vm0, %v254_v32 }
  0x54   : > { %946 = vmatmul.mubr.msk.f32.gmra.mxu0 %vm269_vm0, %v255_v33 }
  0x55   : > { %948 = vmatprep.mubr.msk.f32.mxu0 %vm269_vm0, %v256_v34 }
  0x58   : > { %949 = vmatmul.mubr.msk.f32.gmra.mxu0 %vm269_vm0, %v257_v35 }
  0xdc   : > { %v1226_v37 = vpop.f32.mrf.mxu0 }
  0xde   : > { %v1231_v39 = vpop.f32.mrf.mxu0 }
  0xe0   : > { %v1233_v41 = vpop.f32.mrf.mxu0 }
  0xe2   : > { %v1235_v42 = vpop.f32.mrf.mxu0 }
  0xe4   : > { %v1237_v43 = vpop.f32.mrf.mxu0 }
  0xe6   : > { %v1239_v44 = vpop.f32.mrf.mxu0 }
  0xe8   : > { %v1241_v45 = vpop.f32.mrf.mxu0 }
  0xea   : > { %v1243_v46 = vpop.f32.mrf.mxu0 }
  0xec   : > { %v917_v47 = vpop.f32.mrf.mxu0 }
  0xed   : > { %v478_v32 = vadd.f32 %v917_v47, %v1262_v5 }
  0xee   : > { %v1245_v48 = vpop.f32.mrf.mxu0 }
  0xef   : > { %v600_v38 = vmax.f32 %v478_v32, 0.0  ;;  %v473_v40 = vadd.f32 %v1262_v5, %v1245_v48 }
  0xf0   : > { %v920_v49 = vpop.f32.mrf.mxu0 }
  0xf1   : > { %v488_v24 = vadd.f32 %v920_v49, %v1262_v5 }
  0xf2   : > { %v482_v50 = vpop.f32.mrf.mxu0 }
  0xf3   : > { %v602_v28 = vmax.f32 %v488_v24, 0.0  ;;  %v483_v29 = vadd.f32 %v1262_v5, %v482_v50 }
  0xf4   : > { %v923_v51 = vpop.f32.mrf.mxu0 }
  0xf5   : > { %v498_v16 = vadd.f32 %v923_v51, %v1262_v5  ;;  %v601_v33 = vmax.f32 %v483_v29, 0.0  ;;  %v468_v51 = vadd.f32 %v1241_v45, %v1262_v5 }
  0xf6   : > { %v492_v52 = vpop.f32.mrf.mxu0 }
  0xf7   : > { %v604_v20 = vmax.f32 %v498_v16, 0.0  ;;  %v493_v21 = vadd.f32 %v1262_v5, %v492_v52  ;;  %v599_v52 = vmax.f32 %v473_v40, 0.0 }
  0xf8   : > { %v926_v53 = vpop.f32.mrf.mxu0 }
  0xf9   : > { %v508_v6 = vadd.f32 %v926_v53, %v1262_v5  ;;  %v603_v25 = vmax.f32 %v493_v21, 0.0 }
  0xfa   : > { %v502_v54 = vpop.f32.mrf.mxu0 }
  0xfb   : > { %v606_v12 = vmax.f32 %v508_v6, 0.0  ;;  %v503_v13 = vadd.f32 %v1262_v5, %v502_v54  ;;  %v598_v54 = vmax.f32 %v468_v51, 0.0 }
  0xfc   : > { %v1247_v55 = vpop.f32.mrf.mxu0 }
  0xfd   : > { %v605_v17 = vmax.f32 %v503_v13, 0.0 }
  0xfe   : > { %v1249_v56 = vpop.f32.mrf.mxu0 }
 0x100   : > { %v1251_v57 = vpop.f32.mrf.mxu0 }
 0x102   : > { %v1253_v58 = vpop.f32.mrf.mxu0 }
 0x104   : > { %v1255_v59 = vpop.f32.mrf.mxu0 }
 0x105   : > { %v538_v48 = vadd.f32 %v1255_v59, %v1262_v5  ;;  %v528_v59 = vadd.f32 %v1251_v57, %v1262_v5  ;;  %v518_v57 = vadd.f32 %v1247_v55, %v1262_v5 }
 0x106   : > { %v1257_v60 = vpop.f32.mrf.mxu0 }
 0x107   : > { %v610_v6 = vmax.f32 %v528_v59, 0.0 }
 0x108   : > { %v938_v61 = vpop.f32.mrf.mxu0 }
 0x109   : > { %v548_v49 = vadd.f32 %v938_v61, %v1262_v5 }
 0x10a   : > { %v542_v62 = vpop.f32.mrf.mxu0 }
 0x10b   : > { %v614_v47 = vmax.f32 %v548_v49, 0.0  ;;  %v543_v53 = vadd.f32 %v1262_v5, %v542_v62  ;;  %v533_v62 = vadd.f32 %v1262_v5, %v1257_v60  ;;  %v523_v60 = vadd.f32 %v1262_v5, %v1253_v58 }
 0x10c   : > { %v941_v63 = vpop.f32.mrf.mxu0  ;;  %v513_v58 = vadd.f32 %v1262_v5, %v1249_v56 }
 0x10d   : > { %v558_v30 = vadd.f32 %v941_v63, %v1262_v5  ;;  %v463_v63 = vadd.f32 %v1262_v5, %v1243_v46  ;;  %v613_v61 = vmax.f32 %v543_v53, 0.0  ;;  %v453_v46 = vadd.f32 %v1262_v5, %v1239_v44 }
 0x10e   : > { %v552_v0 = vpop.f32.mrf.mxu0  ;;  %v443_v44 = vadd.f32 %v1262_v5, %v1235_v42  ;;  %v433_v42 = vadd.f32 %v1262_v5, %v1231_v39  ;;  %v607_v55 = vmax.f32 %v513_v58, 0.0 }
 0x10f   : > { %v616_v34 = vmax.f32 %v558_v30, 0.0  ;;  %v553_v35 = vadd.f32 %v1262_v5, %v552_v0  ;;  %v458_v0 = vadd.f32 %v1237_v43, %v1262_v5  ;;  %v597_v45 = vmax.f32 %v463_v63, 0.0 }
 0x110   : > { %v944_v1 = vpop.f32.mrf.mxu0  ;;  %v448_v43 = vadd.f32 %v1233_v41, %v1262_v5  ;;  %v438_v41 = vadd.f32 %v1226_v37, %v1262_v5  ;;  %v628_v37 = vpop.permute.xlu0 %627 }
 0x111   : > { %v568_v22 = vadd.f32 %v944_v1, %v1262_v5  ;;  %v615_v50 = vmax.f32 %v553_v35, 0.0  ;;  %v612_v1 = vmax.f32 %v538_v48, 0.0 }
 0x112   : > { %v562_v2 = vpop.f32.mrf.mxu0 }
 0x113   : > { %v618_v26 = vmax.f32 %v568_v22, 0.0  ;;  %v563_v27 = vadd.f32 %v1262_v5, %v562_v2  ;;  %v596_v2 = vmax.f32 %v458_v0, 0.0 }
 0x114   : > { %v947_v3 = vpop.f32.mrf.mxu0 }
 0x115   : > { %v578_v14 = vadd.f32 %v947_v3, %v1262_v5  ;;  %v617_v31 = vmax.f32 %v563_v27, 0.0  ;;  %v611_v3 = vmax.f32 %v533_v62, 0.0 }
 0x116   : > { %v572_v4 = vpop.f32.mrf.mxu0 }
 0x117   : > { %v620_v18 = vmax.f32 %v578_v14, 0.0  ;;  %v573_v19 = vadd.f32 %v1262_v5, %v572_v4  ;;  %v595_v4 = vmax.f32 %v453_v46, 0.0 }
 0x118   : > { %v950_v7 = vpop.f32.mrf.mxu0 }
 0x119   : > { %v588_v8 = vadd.f32 %v950_v7, %v1262_v5  ;;  %v619_v23 = vmax.f32 %v573_v19, 0.0  ;;  %v594_v7 = vmax.f32 %v448_v43, 0.0 }
 0x11a   : > { %v582_v9 = vpop.f32.mrf.mxu0 }
 0x11b   : > { %v583_v10 = vadd.f32 %v1262_v5, %v582_v9  ;;  %v622_v11 = vmax.f32 %v588_v8, 0.0  ;;  %v609_v8 = vmax.f32 %v523_v60, 0.0  ;;  %v593_v9 = vmax.f32 %v443_v44, 0.0 }
 0x11d   : > { %v621_v15 = vmax.f32 %v583_v10, 0.0  ;;  %861 = vmatprep.subr.mxu1 %v622_v11  ;;  %v608_v10 = vmax.f32 %v518_v57, 0.0  ;;  %v592_v11 = vmax.f32 %v438_v41, 0.0 }
 0x11e   : > { %862 = vmatpush3.xpose.msra.mxu1 %v606_v12  ;;  %v591_v12 = vmax.f32 %v433_v42, 0.0 }
 0x11f   : > { %863 = vmatprep.subr.mxu1 %v621_v15 }
 0x122   : > { %864 = vmatpush3.xpose.msra.mxu1 %v605_v17 }
 0x123   : > { %865 = vmatprep.subr.mxu1 %v620_v18 }
 0x126   : > { %866 = vmatpush3.xpose.msra.mxu1 %v604_v20 }
 0x127   : > { %867 = vmatprep.subr.mxu1 %v619_v23 }
 0x12a   : > { %868 = vmatpush3.xpose.msra.mxu1 %v603_v25 }
 0x12b   : > { %869 = vmatprep.subr.mxu1 %v618_v26 }
 0x12e   : > { %870 = vmatpush3.xpose.msra.mxu1 %v602_v28 }
 0x12f   : > { %871 = vmatprep.subr.mxu1 %v617_v31 }
 0x132   : > { %872 = vmatpush3.xpose.msra.mxu1 %v601_v33 }
 0x133   : > { %873 = vmatprep.subr.mxu1 %v616_v34 }
 0x136   : > { %874 = vmatpush3.xpose.msra.mxu1 %v600_v38 }
 0x137   : > { %875 = vmatprep.subr.mxu1 %v615_v50 }
 0x13a   : > { %876 = vmatpush3.xpose.msra.mxu1 %v599_v52 }
 0x13b   : > { %877 = vmatprep.subr.mxu1 %v614_v47 }
 0x13e   : > { %878 = vmatpush3.xpose.msra.mxu1 %v598_v54 }
 0x13f   : > { %879 = vmatprep.subr.mxu1 %v613_v61 }
 0x142   : > { %880 = vmatpush3.xpose.msra.mxu1 %v597_v45 }
 0x143   : > { %881 = vmatprep.subr.mxu1 %v612_v1 }
 0x146   : > { %882 = vmatpush3.xpose.msra.mxu1 %v596_v2 }
 0x147   : > { %883 = vmatprep.subr.mxu1 %v611_v3 }
 0x14a   : > { %884 = vmatpush3.xpose.msra.mxu1 %v595_v4 }
 0x14b   : > { %885 = vmatprep.subr.mxu1 %v610_v6 }
 0x14e   : > { %886 = vmatpush3.xpose.msra.mxu1 %v594_v7 }
 0x14f   : > { %887 = vmatprep.subr.mxu1 %v609_v8 }
 0x152   : > { %888 = vmatpush3.xpose.msra.mxu1 %v593_v9 }
 0x153   : > { %889 = vmatprep.subr.mxu1 %v608_v10 }
 0x156   : > { %890 = vmatpush3.xpose.msra.mxu1 %v592_v11 }
 0x157   : > { %891 = vmatprep.subr.mxu1 %v607_v55 }
 0x15a   : > { %892 = vmatpush3.xpose.msra.mxu1 %v591_v12 }
 0x15d   : > { %894 = vmatmul.mubr.f32.vlgmr.msra.gmra.mxu1 %v1223_v36 }
 0x21d   : > { %v696_v13 = vpop.f32.mrf.mxu1 }
 0x21e   : > { %v697_v14 = vadd.f32 %v696_v13, %v628_v37 }
 0x21f   : > { %v698_v15 = vpop.f32.mrf.mxu1 }
 0x220   : > { %992 = vtanh.f32 %v697_v14  ;;  %v699_v56 = vadd.f32 %v698_v15, %v628_v37 }
 0x222   : > { %994 = vtanh.f32 %v699_v56 }
 0x22d   : > { %v993_v39 = vpop.eup %992 }
 0x22e   : > { %703 = vst [vmem:[%s218_s11] sm:$0xff] %v993_v39 }
 0x22f   : > { %v995_v36 = vpop.eup %994 }
 0x230   : > { %704 = vst [vmem:[%s218_s11 + $0x8] sm:$0xff] %v995_v36 }
 0x231   : > { %1009 = shalt.err (!%p1006_p3)
}
 0x232   : > { %s1010_s26 = scalar_lea.hbm %s1317_s15, 256  ;;  %s1014_s7 = scalar_lea.hbm %s1357_s5, 512 }
 0x233   : > { %p1011_p4 = scmp.ne.s32.totalorder %s1317_s15, %s1010_s26  ;;  %p1015_p9 = scmp.lt.s32.totalorder %s1317_s15, %s1357_s5 }
 0x234   : > { %p1016_p10 = scmp.lt.s32.totalorder %s1014_s7, %s1010_s26 }
 0x235   : > { %p1012_p7 = pnand %p1011_p4, %p1128_p5 }
 0x236   : > { %p1017_p11 = por %p1016_p10, %p1015_p9 }
 0x237   : > { %p1013_p8 = pneg %p1012_p7 }
 0x239   : > { %p1018_p12 = pnand %p1017_p11, %p1013_p8 }
 0x23b   : > { %1021 = shalt.err (!%p1018_p12)
}
 0x23c   : > { %951 = dma.vmem_to_hbm [thread:$0]  (%p1128_p5), %s721_s12, 256, %s1317_s15, %s706_s16  }
 0x23d PF: > { %p957_p13 = scmp.ge.s32.totalorder %s1056_s21, 2  ;;  %s732_s10 = sand.u32 1, %s1044_s18  }
 0x23e   : > { %s733_s11 = scalar_lea.sflag [#allocation3], %s732_s10 }
 0x23f   : > { %p954_p0 = pnand %p957_p13, %p1132_p6 }
 0x241   : > { %p955_p1 = pneg %p954_p0 }
 0x243   : > { %1039 = dma.done.wait (%p955_p1), %s733_s11, 256  }
 0x244   : > { %1041 = vsyncadd (%p955_p1), %s733_s11, 4294967040  ;;  %p15_p2 = scmp.ge.s32.totalorder %s1115_s24, 4   ;;  %s1360_s18 = smov %s1048_s19 }
 0x245   : > { %s1361_s19 = smov %s1052_s20  ;;  %s1362_s20 = smov %s1126_s27 }
 0x246   : > { %s1363_s21 = smov %s1115_s24  ;;  %17 = sbr.rel (!%p15_p2) target bundleno = 3 (0x3), region = 75 }
 0x24b   :  { %738 = vsyncpa [#allocation3], 1 }
 0x24c   :  { %740 = vsyncpa [#allocation3 + $0x1], 1 }

</bundles_post_ra>
